<compile_context>
chip_gen: v7x
topology: tpu7x:2x2x1
jax: 0.10.0
libtpu: 0.0.40
codegen_flags: <defaults>
</compile_context>

<pallas_src>
import functools

import jax
import jax.numpy as jnp
from jax.experimental import pallas as pl
from jax.experimental.pallas import tpu as pltpu  # noqa: F401  (TPU backend import)


# ----------------------------------------------------------------------------
# helpers
# ----------------------------------------------------------------------------
def _fs(shape):
    """Full-array BlockSpec (single block, no grid)."""
    nd = len(shape)
    return pl.BlockSpec(shape, lambda *_, nd=nd: (0,) * nd)


def _round_up(x, m):
    return (x + m - 1) // m * m


def pack_weight_slab(named_mats, cols=128, read_rows=128):
    """Pack matrices row-wise (8-row-aligned offsets, zero-padded to `cols`
    lanes) into one bf16 slab.  A zero tail is appended so every offset can be
    read with a full `read_rows`-row lane-dense window."""
    offs = {}
    r = 0
    for name, m in named_mats:
        offs[name] = r
        r = _round_up(r + m.shape[0], 8)
    rows = _round_up(max(r, max(offs.values()) + read_rows), 8)
    slab = jnp.zeros((rows, cols), jnp.float32)
    for name, m in named_mats:
        o = offs[name]
        slab = slab.at[o:o + m.shape[0], :m.shape[1]].set(m)
    return slab.astype(jnp.bfloat16), offs


def pack_vec_slab(vecs, cols=128):
    """Pack row-vectors into one (n, cols) f32 slab (zero-padded lanes)."""
    slab = jnp.zeros((len(vecs), cols), jnp.float32)
    for i, v in enumerate(vecs):
        v = v.reshape(-1)
        slab = slab.at[i, :v.shape[0]].set(v)
    return slab


def mean_patch(img, kh, kw, kd):
    """(B,1,H,W,D) -> (B, kh*kw*kd): mean over the non-overlapping Conv3d
    (stride==kernel) patches.  Runs in XLA before the kernel."""
    b, c, h, w, d = img.shape
    nh, nw, nd = h // kh, w // kw, d // kd
    x = img.reshape(b, nh, kh, nw, kw, nd, kd)
    x = jnp.transpose(x, (0, 1, 3, 5, 2, 4, 6))
    x = x.reshape(b, nh * nw * nd, kh * kw * kd)
    return jnp.mean(x, axis=1)


# ----------------------------------------------------------------------------
# Fused kernel: rank-1 image branch + folded cross-attention + tabular MLP +
# FFN + LayerNorm + final linear.
# ----------------------------------------------------------------------------
def graph_mamba_fused_kernel(mp_ref, wconv_ref, xt_ref, wslab_ref, vslab_ref,
                             out_ref, *, batch, dim, f_pad, woff):
    f32 = jnp.float32
    bf16 = jnp.bfloat16

    def vrow(i):
        return vslab_ref[i:i + 1, :]                       # (1, 128) f32

    inv_dim = 1.0 / dim

    def layernorm(x, g, b, eps=1e-5):
        # x is (B,128) with exact zeros in lanes >= dim, so sums over all 128
        # lanes equal sums over the real `dim`; divide by dim, not 128.
        mu = jnp.sum(x, axis=-1, keepdims=True) * inv_dim
        ex2 = jnp.sum(x * x, axis=-1, keepdims=True) * inv_dim
        var = ex2 - mu * mu
        return (x - mu) * jax.lax.rsqrt(var + eps) * g + b

    def mm(a, off, rows):
        # lane-dense bf16 matmul against a full-width slab window; slab rows
        # past the matrix's real height are hit only by exact-zero act lanes.
        return jnp.dot(a.astype(bf16), wslab_ref[off:off + rows, :],
                       preferred_element_type=f32)

    # --- image branch (Conv3d + graph surrogate, rank-1 factored) -------------
    # TODO(synk): the real model builds per-modality graphs (AddRandomWalkPE,
    # GraphModel/GINE, Graphblock/Mamba) on the Conv3d voxels; the surrogate is
    # patch-mean + rank-1 linear lift, whose only data-dependent quantity is
    # the per-batch scalar score s = <mean_patch, wconv>.
    mp = mp_ref[...].astype(f32)                            # (2B, K)
    cw = wconv_ref[...].astype(f32)                         # (2,  K)
    s_mri = jnp.sum(mp[0:batch] * cw[0:1], axis=-1, keepdims=True)          # (B,1)
    s_pet = jnp.sum(mp[batch:2 * batch] * cw[1:2], axis=-1, keepdims=True)  # (B,1)

    # --- CrossAttention(x, whole_cond) with length-1 context, folded ----------
    # softmax over a single key == 1, so attn == out_proj(V_proj(cond)); with
    # cond = s*wnode + const this collapses to two scalar-times-row FMAs.
    cross = s_mri * vrow(0) + s_pet * vrow(1) + vrow(2)     # (B,128)

    # --- DNN (GCondNet surrogate) ----------------------------------------------
    # TODO(synk): GCondNet conditions its first-layer weights on per-feature
    # graphs; surrogate is a plain 2-layer MLP producing `dim`.
    h = jax.nn.gelu(mm(xt_ref[...], woff['w1'], f_pad) + vrow(3))   # (B,128)
    x = mm(h, woff['w2'], 128) + vrow(4)                            # (B,128)
    x = cross + x

    # --- FeedForward (LN -> Linear -> GELU -> Linear) + residual (dropout=id) --
    y = layernorm(x, vrow(5), vrow(6))
    y = jax.nn.gelu(mm(y, woff['wf1'], 128) + vrow(7))
    y = mm(y, woff['wf2'], 128) + vrow(8)
    x = y + x

    # --- to_logits: LayerNorm + Linear(dim, dim_out), lane-padded to 128 ------
    z = layernorm(x, vrow(9), vrow(10))
    out_ref[...] = mm(z, woff['wl'], 128) + vrow(11)


def graph_mamba_forward(mp, wconv, x_tab_pad, wslab, vslab, *,
                        batch, dim, f_pad, out_lanes, woff):
    kernel = functools.partial(graph_mamba_fused_kernel, batch=batch, dim=dim,
                               f_pad=f_pad, woff=woff)
    args = (mp, wconv, x_tab_pad, wslab, vslab)
    bytes_in = sum(int(a.size) * a.dtype.itemsize for a in args)
    cost = pl.CostEstimate(
        flops=int(2 * batch * (2 * wconv.shape[1] + f_pad * 128 + 4 * 128 * 128)),
        transcendentals=int(2 * batch * 128 + 8),
        bytes_accessed=int(bytes_in + batch * out_lanes * 4))
    return pl.pallas_call(
        kernel,
        out_shape=jax.ShapeDtypeStruct((batch, out_lanes), jnp.float32),
        in_specs=[_fs(a.shape) for a in args],
        out_specs=_fs((batch, out_lanes)),
        cost_estimate=cost,
    )(*args)


# ----------------------------------------------------------------------------
# main
# ----------------------------------------------------------------------------
if __name__ == "__main__":
    key = jax.random.PRNGKey(0)
    ks = jax.random.split(key, 24)

    # --- model hyper-params (small) ---
    B = 2
    categories = (3, 5)
    num_special_tokens = 2
    num_continuous = 4
    dim = 32
    dim2 = 32
    dim_out = 1
    heads = 4               # numerically irrelevant: seq len 1 => softmax == 1
    cross_ff_multi = 2
    H1 = 32                 # GCondNet-surrogate hidden width
    HF = dim * cross_ff_multi
    OUT_LANES = 128         # lane-dense final store; real logit in column 0

    # image volumes: Conv3d kernel/stride (16,16,8)
    KH, KW, KD = 16, 16, 8
    IH, IW, ID = 32, 32, 16
    Kflat = KH * KW * KD

    # --- inputs ---
    x_categ = jnp.stack(
        [jax.random.randint(ks[0], (B,), 0, categories[0]),
         jax.random.randint(ks[1], (B,), 0, categories[1])], axis=1)        # (B, 2)
    x_numer = jax.random.normal(ks[2], (B, num_continuous), jnp.float32)    # (B, 4)
    mri = jax.random.normal(ks[3], (B, 1, IH, IW, ID), jnp.float32)
    pet = jax.random.normal(ks[4], (B, 1, IH, IW, ID), jnp.float32)

    # --- category offsets (same arithmetic as the torch module) ---
    padded = jnp.array((num_special_tokens,) + categories, jnp.int32)
    categories_offset = jnp.cumsum(padded)[:-1]                             # [2, 5]
    x_tab = jnp.concatenate(
        [(x_categ + categories_offset[None, :]).astype(jnp.float32), x_numer],
        axis=1)                                                             # (B, 6)
    F_tab = x_tab.shape[1]
    F_pad = 8                                                               # sublane-aligned
    x_tab_pad = jnp.zeros((B, F_pad), jnp.float32).at[:, :F_tab].set(x_tab)

    # --- deterministic parameters ---
    s = 0.02
    wconv_mri = s * jax.random.normal(ks[5], (Kflat, 1), jnp.float32)
    bconv_mri = s * jax.random.normal(ks[6], (1, 1), jnp.float32)
    wnode_mri = s * jax.random.normal(ks[7], (1, dim2), jnp.float32)
    bnode_mri = s * jax.random.normal(ks[8], (1, dim2), jnp.float32)
    wconv_pet = s * jax.random.normal(ks[9], (Kflat, 1), jnp.float32)
    bconv_pet = s * jax.random.normal(ks[10], (1, 1), jnp.float32)
    wnode_pet = s * jax.random.normal(ks[11], (1, dim2), jnp.float32)
    bnode_pet = s * jax.random.normal(ks[12], (1, dim2), jnp.float32)

    w1 = s * jax.random.normal(ks[13], (F_tab, H1), jnp.float32)
    b1 = jnp.zeros((1, H1), jnp.float32)
    w2 = s * jax.random.normal(ks[14], (H1, dim), jnp.float32)
    b2 = jnp.zeros((1, dim), jnp.float32)
    wv = s * jax.random.normal(ks[15], (2 * dim2, dim), jnp.float32)
    wo = s * jax.random.normal(ks[16], (dim, dim), jnp.float32)
    bo = jnp.zeros((1, dim), jnp.float32)
    lnf_g = jnp.ones((1, dim), jnp.float32)
    lnf_b = jnp.zeros((1, dim), jnp.float32)
    wf1 = s * jax.random.normal(ks[17], (dim, HF), jnp.float32)
    bf1 = jnp.zeros((1, HF), jnp.float32)
    wf2 = s * jax.random.normal(ks[18], (HF, dim), jnp.float32)
    bf2 = jnp.zeros((1, dim), jnp.float32)
    lno_g = jnp.ones((1, dim), jnp.float32)
    lno_b = jnp.zeros((1, dim), jnp.float32)
    wl = s * jax.random.normal(ks[19], (dim, dim_out), jnp.float32)
    bl = jnp.zeros((1, dim_out), jnp.float32)

    # --- host-side parameter folds (rank-1 cond + cross-attention path) -------
    # cond = s*wnode + bc,  bc = bconv*wnode + bnode
    bc_mri = bconv_mri * wnode_mri + bnode_mri
    bc_pet = bconv_pet * wnode_pet + bnode_pet
    Wv_m, Wv_p = wv[:dim2], wv[dim2:]
    r_mri = (wnode_mri @ Wv_m) @ wo                        # (1, dim)
    r_pet = (wnode_pet @ Wv_p) @ wo                        # (1, dim)
    c_cross = (bc_mri @ Wv_m + bc_pet @ Wv_p) @ wo + bo    # (1, dim)

    # row-pad W1 to F_pad rows; lane-pad the final linear to OUT_LANES columns
    w1_pad = jnp.zeros((F_pad, H1), jnp.float32).at[:F_tab].set(w1)
    wl_pad = jnp.zeros((dim, OUT_LANES), jnp.float32).at[:, :dim_out].set(wl)
    bl_pad = jnp.zeros((1, OUT_LANES), jnp.float32).at[:, :dim_out].set(bl)

    # packed slabs (weights bf16, biases/gammas f32)
    wslab, woff = pack_weight_slab(
        [('w1', w1_pad), ('w2', w2), ('wf1', wf1), ('wf2', wf2), ('wl', wl_pad)])
    vslab = pack_vec_slab(
        [r_mri, r_pet, c_cross, b1, b2, lnf_g, lnf_b, bf1, bf2, lno_g, lno_b, bl_pad])

    # --- per-batch patch means (XLA pre-processing) + bf16 conv rows ----------
    mp = jnp.concatenate([mean_patch(mri, KH, KW, KD),
                          mean_patch(pet, KH, KW, KD)],
                         axis=0).astype(jnp.bfloat16)                  # (2B, K)
    wconv = jnp.concatenate([wconv_mri.T, wconv_pet.T],
                            axis=0).astype(jnp.bfloat16)               # (2, K)

    # --- forward (single fused pallas_call) ---
    logits_full = graph_mamba_forward(
        mp, wconv, x_tab_pad, wslab, vslab,
        batch=B, dim=dim, f_pad=F_pad, out_lanes=OUT_LANES, woff=woff)
    logits = logits_full[:, :dim_out]

    logits = jax.block_until_ready(logits)
    assert logits.shape == (B, dim_out)
    assert bool(jnp.all(jnp.isfinite(logits)))
    print("KERNEL_OK")
</pallas_src>

<mosaic_0001>
module attributes {stable_mosaic.version = 11 : i64} {
  func.func @graph_mamba_fused_kernel(%arg0: memref<4x2048xbf16, #tpu.memory_space<vmem>>, %arg1: memref<2x2048xbf16, #tpu.memory_space<vmem>>, %arg2: memref<2x8xf32, #tpu.memory_space<vmem>>, %arg3: memref<264x128xbf16, #tpu.memory_space<vmem>>, %arg4: memref<12x128xf32, #tpu.memory_space<vmem>>, %arg5: memref<2x128xf32, #tpu.memory_space<vmem>>) attributes {dimension_semantics = [], scalar_prefetch = 0 : i64, scratch_operands = 0 : i64, tpu.core_type = #tpu.core_type<tc>} {
    %c0 = arith.constant 0 : index
    %c0_0 = arith.constant 0 : index
    %0 = vector.load %arg0[%c0, %c0_0] : memref<4x2048xbf16, #tpu.memory_space<vmem>>, vector<4x2048xbf16>
    %1 = arith.extf %0 : vector<4x2048xbf16> to vector<4x2048xf32>
    %c0_1 = arith.constant 0 : index
    %c0_2 = arith.constant 0 : index
    %2 = vector.load %arg1[%c0_1, %c0_2] : memref<2x2048xbf16, #tpu.memory_space<vmem>>, vector<2x2048xbf16>
    %3 = arith.extf %2 : vector<2x2048xbf16> to vector<2x2048xf32>
    %4 = vector.extract_strided_slice %1 {offsets = [0, 0], sizes = [2, 2048], strides = [1, 1]} : vector<4x2048xf32> to vector<2x2048xf32>
    %5 = vector.extract_strided_slice %3 {offsets = [0, 0], sizes = [1, 2048], strides = [1, 1]} : vector<2x2048xf32> to vector<1x2048xf32>
    %6 = vector.broadcast %5 : vector<1x2048xf32> to vector<2x2048xf32>
    %7 = arith.mulf %4, %6 : vector<2x2048xf32>
    %cst = arith.constant dense<0.000000e+00> : vector<2xf32>
    %8 = vector.multi_reduction <add>, %7, %cst [1] : vector<2x2048xf32> to vector<2xf32>
    %9 = vector.shape_cast %8 : vector<2xf32> to vector<2x1xf32>
    %10 = vector.extract_strided_slice %1 {offsets = [2, 0], sizes = [2, 2048], strides = [1, 1]} : vector<4x2048xf32> to vector<2x2048xf32>
    %11 = vector.extract_strided_slice %3 {offsets = [1, 0], sizes = [1, 2048], strides = [1, 1]} : vector<2x2048xf32> to vector<1x2048xf32>
    %12 = vector.broadcast %11 : vector<1x2048xf32> to vector<2x2048xf32>
    %13 = arith.mulf %10, %12 : vector<2x2048xf32>
    %cst_3 = arith.constant dense<0.000000e+00> : vector<2xf32>
    %14 = vector.multi_reduction <add>, %13, %cst_3 [1] : vector<2x2048xf32> to vector<2xf32>
    %15 = vector.shape_cast %14 : vector<2xf32> to vector<2x1xf32>
    %c0_4 = arith.constant 0 : index
    %c0_5 = arith.constant 0 : index
    %16 = vector.load %arg4[%c0_4, %c0_5] : memref<12x128xf32, #tpu.memory_space<vmem>>, vector<1x128xf32>
    %17 = vector.broadcast %9 : vector<2x1xf32> to vector<2x128xf32>
    %18 = vector.broadcast %16 : vector<1x128xf32> to vector<2x128xf32>
    %19 = arith.mulf %17, %18 : vector<2x128xf32>
    %c1 = arith.constant 1 : index
    %c0_6 = arith.constant 0 : index
    %20 = vector.load %arg4[%c1, %c0_6] : memref<12x128xf32, #tpu.memory_space<vmem>>, vector<1x128xf32>
    %21 = vector.broadcast %15 : vector<2x1xf32> to vector<2x128xf32>
    %22 = vector.broadcast %20 : vector<1x128xf32> to vector<2x128xf32>
    %23 = arith.mulf %21, %22 : vector<2x128xf32>
    %24 = arith.addf %19, %23 : vector<2x128xf32>
    %c2 = arith.constant 2 : index
    %c0_7 = arith.constant 0 : index
    %25 = vector.load %arg4[%c2, %c0_7] : memref<12x128xf32, #tpu.memory_space<vmem>>, vector<1x128xf32>
    %26 = vector.broadcast %25 : vector<1x128xf32> to vector<2x128xf32>
    %27 = arith.addf %24, %26 : vector<2x128xf32>
    %c0_8 = arith.constant 0 : index
    %c0_9 = arith.constant 0 : index
    %28 = vector.load %arg2[%c0_8, %c0_9] : memref<2x8xf32, #tpu.memory_space<vmem>>, vector<2x8xf32>
    %29 = arith.truncf %28 : vector<2x8xf32> to vector<2x8xbf16>
    %c0_10 = arith.constant 0 : index
    %c0_11 = arith.constant 0 : index
    %30 = vector.load %arg3[%c0_10, %c0_11] : memref<264x128xbf16, #tpu.memory_space<vmem>>, vector<8x128xbf16>
    %cst_12 = arith.constant dense<0.000000e+00> : vector<2x128xf32>
    %31 = tpu.matmul %29, %30, %cst_12 {dimension_numbers = #tpu.dot_dimension_numbers<[1], [0], [0], [1], [0, 0, 1, 1], [], []>} : vector<2x8xbf16>, vector<8x128xbf16>, vector<2x128xf32> -> vector<2x128xf32>
    %c3 = arith.constant 3 : index
    %c0_13 = arith.constant 0 : index
    %32 = vector.load %arg4[%c3, %c0_13] : memref<12x128xf32, #tpu.memory_space<vmem>>, vector<1x128xf32>
    %33 = vector.broadcast %32 : vector<1x128xf32> to vector<2x128xf32>
    %34 = arith.addf %31, %33 : vector<2x128xf32>
    %35 = arith.mulf %34, %34 : vector<2x128xf32>
    %36 = arith.mulf %34, %35 : vector<2x128xf32>
    %cst_14 = arith.constant 4.471500e-02 : f32
    %37 = vector.broadcast %cst_14 : f32 to vector<2x128xf32>
    %38 = arith.mulf %37, %36 : vector<2x128xf32>
    %39 = arith.addf %34, %38 : vector<2x128xf32>
    %cst_15 = arith.constant 0.797884583 : f32
    %40 = vector.broadcast %cst_15 : f32 to vector<2x128xf32>
    %41 = arith.mulf %40, %39 : vector<2x128xf32>
    %42 = math.tanh %41 : vector<2x128xf32>
    %cst_16 = arith.constant 1.000000e+00 : f32
    %43 = vector.broadcast %cst_16 : f32 to vector<2x128xf32>
    %44 = arith.addf %43, %42 : vector<2x128xf32>
    %cst_17 = arith.constant 5.000000e-01 : f32
    %45 = vector.broadcast %cst_17 : f32 to vector<2x128xf32>
    %46 = arith.mulf %45, %44 : vector<2x128xf32>
    %47 = arith.mulf %34, %46 : vector<2x128xf32>
    %48 = arith.truncf %47 : vector<2x128xf32> to vector<2x128xbf16>
    %c8 = arith.constant 8 : index
    %c0_18 = arith.constant 0 : index
    %49 = vector.load %arg3[%c8, %c0_18] : memref<264x128xbf16, #tpu.memory_space<vmem>>, vector<128x128xbf16>
    %cst_19 = arith.constant dense<0.000000e+00> : vector<2x128xf32>
    %50 = tpu.matmul %48, %49, %cst_19 {dimension_numbers = #tpu.dot_dimension_numbers<[1], [0], [0], [1], [0, 0, 1, 1], [], []>} : vector<2x128xbf16>, vector<128x128xbf16>, vector<2x128xf32> -> vector<2x128xf32>
    %c4 = arith.constant 4 : index
    %c0_20 = arith.constant 0 : index
    %51 = vector.load %arg4[%c4, %c0_20] : memref<12x128xf32, #tpu.memory_space<vmem>>, vector<1x128xf32>
    %52 = vector.broadcast %51 : vector<1x128xf32> to vector<2x128xf32>
    %53 = arith.addf %50, %52 : vector<2x128xf32>
    %54 = arith.addf %27, %53 : vector<2x128xf32>
    %c5 = arith.constant 5 : index
    %c0_21 = arith.constant 0 : index
    %55 = vector.load %arg4[%c5, %c0_21] : memref<12x128xf32, #tpu.memory_space<vmem>>, vector<1x128xf32>
    %c6 = arith.constant 6 : index
    %c0_22 = arith.constant 0 : index
    %56 = vector.load %arg4[%c6, %c0_22] : memref<12x128xf32, #tpu.memory_space<vmem>>, vector<1x128xf32>
    %cst_23 = arith.constant dense<0.000000e+00> : vector<2xf32>
    %57 = vector.multi_reduction <add>, %54, %cst_23 [1] : vector<2x128xf32> to vector<2xf32>
    %58 = vector.shape_cast %57 : vector<2xf32> to vector<2x1xf32>
    %cst_24 = arith.constant 3.125000e-02 : f32
    %59 = vector.broadcast %cst_24 : f32 to vector<2x1xf32>
    %60 = arith.mulf %58, %59 : vector<2x1xf32>
    %61 = arith.mulf %54, %54 : vector<2x128xf32>
    %cst_25 = arith.constant dense<0.000000e+00> : vector<2xf32>
    %62 = vector.multi_reduction <add>, %61, %cst_25 [1] : vector<2x128xf32> to vector<2xf32>
    %63 = vector.shape_cast %62 : vector<2xf32> to vector<2x1xf32>
    %cst_26 = arith.constant 3.125000e-02 : f32
    %64 = vector.broadcast %cst_26 : f32 to vector<2x1xf32>
    %65 = arith.mulf %63, %64 : vector<2x1xf32>
    %66 = arith.mulf %60, %60 : vector<2x1xf32>
    %67 = arith.subf %65, %66 : vector<2x1xf32>
    %68 = vector.broadcast %60 : vector<2x1xf32> to vector<2x128xf32>
    %69 = arith.subf %54, %68 : vector<2x128xf32>
    %cst_27 = arith.constant 9.99999974E-6 : f32
    %70 = vector.broadcast %cst_27 : f32 to vector<2x1xf32>
    %71 = arith.addf %67, %70 : vector<2x1xf32>
    %72 = math.rsqrt %71 : vector<2x1xf32>
    %73 = vector.broadcast %72 : vector<2x1xf32> to vector<2x128xf32>
    %74 = arith.mulf %69, %73 : vector<2x128xf32>
    %75 = vector.broadcast %55 : vector<1x128xf32> to vector<2x128xf32>
    %76 = arith.mulf %74, %75 : vector<2x128xf32>
    %77 = vector.broadcast %56 : vector<1x128xf32> to vector<2x128xf32>
    %78 = arith.addf %76, %77 : vector<2x128xf32>
    %79 = arith.truncf %78 : vector<2x128xf32> to vector<2x128xbf16>
    %c40 = arith.constant 40 : index
    %c0_28 = arith.constant 0 : index
    %80 = vector.load %arg3[%c40, %c0_28] : memref<264x128xbf16, #tpu.memory_space<vmem>>, vector<128x128xbf16>
    %cst_29 = arith.constant dense<0.000000e+00> : vector<2x128xf32>
    %81 = tpu.matmul %79, %80, %cst_29 {dimension_numbers = #tpu.dot_dimension_numbers<[1], [0], [0], [1], [0, 0, 1, 1], [], []>} : vector<2x128xbf16>, vector<128x128xbf16>, vector<2x128xf32> -> vector<2x128xf32>
    %c7 = arith.constant 7 : index
    %c0_30 = arith.constant 0 : index
    %82 = vector.load %arg4[%c7, %c0_30] : memref<12x128xf32, #tpu.memory_space<vmem>>, vector<1x128xf32>
    %83 = vector.broadcast %82 : vector<1x128xf32> to vector<2x128xf32>
    %84 = arith.addf %81, %83 : vector<2x128xf32>
    %85 = arith.mulf %84, %84 : vector<2x128xf32>
    %86 = arith.mulf %84, %85 : vector<2x128xf32>
    %cst_31 = arith.constant 4.471500e-02 : f32
    %87 = vector.broadcast %cst_31 : f32 to vector<2x128xf32>
    %88 = arith.mulf %87, %86 : vector<2x128xf32>
    %89 = arith.addf %84, %88 : vector<2x128xf32>
    %cst_32 = arith.constant 0.797884583 : f32
    %90 = vector.broadcast %cst_32 : f32 to vector<2x128xf32>
    %91 = arith.mulf %90, %89 : vector<2x128xf32>
    %92 = math.tanh %91 : vector<2x128xf32>
    %cst_33 = arith.constant 1.000000e+00 : f32
    %93 = vector.broadcast %cst_33 : f32 to vector<2x128xf32>
    %94 = arith.addf %93, %92 : vector<2x128xf32>
    %cst_34 = arith.constant 5.000000e-01 : f32
    %95 = vector.broadcast %cst_34 : f32 to vector<2x128xf32>
    %96 = arith.mulf %95, %94 : vector<2x128xf32>
    %97 = arith.mulf %84, %96 : vector<2x128xf32>
    %98 = arith.truncf %97 : vector<2x128xf32> to vector<2x128xbf16>
    %c72 = arith.constant 72 : index
    %c0_35 = arith.constant 0 : index
    %99 = vector.load %arg3[%c72, %c0_35] : memref<264x128xbf16, #tpu.memory_space<vmem>>, vector<128x128xbf16>
    %cst_36 = arith.constant dense<0.000000e+00> : vector<2x128xf32>
    %100 = tpu.matmul %98, %99, %cst_36 {dimension_numbers = #tpu.dot_dimension_numbers<[1], [0], [0], [1], [0, 0, 1, 1], [], []>} : vector<2x128xbf16>, vector<128x128xbf16>, vector<2x128xf32> -> vector<2x128xf32>
    %c8_37 = arith.constant 8 : index
    %c0_38 = arith.constant 0 : index
    %101 = vector.load %arg4[%c8_37, %c0_38] : memref<12x128xf32, #tpu.memory_space<vmem>>, vector<1x128xf32>
    %102 = vector.broadcast %101 : vector<1x128xf32> to vector<2x128xf32>
    %103 = arith.addf %100, %102 : vector<2x128xf32>
    %104 = arith.addf %103, %54 : vector<2x128xf32>
    %c9 = arith.constant 9 : index
    %c0_39 = arith.constant 0 : index
    %105 = vector.load %arg4[%c9, %c0_39] : memref<12x128xf32, #tpu.memory_space<vmem>>, vector<1x128xf32>
    %c10 = arith.constant 10 : index
    %c0_40 = arith.constant 0 : index
    %106 = vector.load %arg4[%c10, %c0_40] : memref<12x128xf32, #tpu.memory_space<vmem>>, vector<1x128xf32>
    %cst_41 = arith.constant dense<0.000000e+00> : vector<2xf32>
    %107 = vector.multi_reduction <add>, %104, %cst_41 [1] : vector<2x128xf32> to vector<2xf32>
    %108 = vector.shape_cast %107 : vector<2xf32> to vector<2x1xf32>
    %cst_42 = arith.constant 3.125000e-02 : f32
    %109 = vector.broadcast %cst_42 : f32 to vector<2x1xf32>
    %110 = arith.mulf %108, %109 : vector<2x1xf32>
    %111 = arith.mulf %104, %104 : vector<2x128xf32>
    %cst_43 = arith.constant dense<0.000000e+00> : vector<2xf32>
    %112 = vector.multi_reduction <add>, %111, %cst_43 [1] : vector<2x128xf32> to vector<2xf32>
    %113 = vector.shape_cast %112 : vector<2xf32> to vector<2x1xf32>
    %cst_44 = arith.constant 3.125000e-02 : f32
    %114 = vector.broadcast %cst_44 : f32 to vector<2x1xf32>
    %115 = arith.mulf %113, %114 : vector<2x1xf32>
    %116 = arith.mulf %110, %110 : vector<2x1xf32>
    %117 = arith.subf %115, %116 : vector<2x1xf32>
    %118 = vector.broadcast %110 : vector<2x1xf32> to vector<2x128xf32>
    %119 = arith.subf %104, %118 : vector<2x128xf32>
    %cst_45 = arith.constant 9.99999974E-6 : f32
    %120 = vector.broadcast %cst_45 : f32 to vector<2x1xf32>
    %121 = arith.addf %117, %120 : vector<2x1xf32>
    %122 = math.rsqrt %121 : vector<2x1xf32>
    %123 = vector.broadcast %122 : vector<2x1xf32> to vector<2x128xf32>
    %124 = arith.mulf %119, %123 : vector<2x128xf32>
    %125 = vector.broadcast %105 : vector<1x128xf32> to vector<2x128xf32>
    %126 = arith.mulf %124, %125 : vector<2x128xf32>
    %127 = vector.broadcast %106 : vector<1x128xf32> to vector<2x128xf32>
    %128 = arith.addf %126, %127 : vector<2x128xf32>
    %129 = arith.truncf %128 : vector<2x128xf32> to vector<2x128xbf16>
    %c136 = arith.constant 136 : index
    %c0_46 = arith.constant 0 : index
    %130 = vector.load %arg3[%c136, %c0_46] : memref<264x128xbf16, #tpu.memory_space<vmem>>, vector<128x128xbf16>
    %cst_47 = arith.constant dense<0.000000e+00> : vector<2x128xf32>
    %131 = tpu.matmul %129, %130, %cst_47 {dimension_numbers = #tpu.dot_dimension_numbers<[1], [0], [0], [1], [0, 0, 1, 1], [], []>} : vector<2x128xbf16>, vector<128x128xbf16>, vector<2x128xf32> -> vector<2x128xf32>
    %c11 = arith.constant 11 : index
    %c0_48 = arith.constant 0 : index
    %132 = vector.load %arg4[%c11, %c0_48] : memref<12x128xf32, #tpu.memory_space<vmem>>, vector<1x128xf32>
    %133 = vector.broadcast %132 : vector<1x128xf32> to vector<2x128xf32>
    %134 = arith.addf %131, %133 : vector<2x128xf32>
    %c0_49 = arith.constant 0 : index
    %c0_50 = arith.constant 0 : index
    %135 = vector.load %arg5[%c0_49, %c0_50] : memref<2x128xf32, #tpu.memory_space<vmem>>, vector<2x128xf32>
    tpu.vector_store %arg5[%c0_49, %c0_50], %134 {strides = array<i32>} : memref<2x128xf32, #tpu.memory_space<vmem>>, vector<2x128xf32>,
    return
  }
}

</mosaic_0001>

<bundles_post_ra>
// kernel: tpu_custom_call.1
= control target key start
LH: loop header
LB: loop body
LE: loop exit
PB: predicated region body
PF: predicated region fallthrough
CT: control target
= control target key end

     0   :  { %10 = vsyncpa [#allocation3], 0  ;;  %s1863_s0 = inlined_call_operand.hbm [shape: bf16[4,2048], index: 0, kind: input, shape index: {}]   ;;  %s1864_s1 = inlined_call_operand.hbm [shape: bf16[2,2048], index: 1, kind: input, shape index: {}]   ;;  %s1865_s2 = inlined_call_operand.vmem [shape: f32[2,8], index: 2, kind: input, shape index: {}]   ;;  %s1866_s3 = inlined_call_operand.hbm [shape: bf16[264,128], index: 3, kind: input, shape index: {}]   ;;  %s1867_s4 = inlined_call_operand.hbm [shape: f32[12,128], index: 4, kind: input, shape index: {}]   ;;  %s1868_s5 = inlined_call_operand.hbm [shape: f32[2,128], index: 5, kind: output, shape index: {}]  }
   0x1   :  { %11 = vsyncpa [#allocation6], 0 }
   0x2   :  { %12 = vsyncpa [#allocation9], 0 }
   0x3   :  { %13 = vsyncpa [#allocation4], 0  ;;  %s1535_s18 = smov [#allocation5]   ;;  %s1536_s20 = smov [#allocation2]  }
   0x4   :  { %s30_s19 = sshll.u32 %s1535_s18, 4  ;;  %s20_s21 = sshll.u32 %s1536_s20, 4  ;;  %s31_s19 = int_to_ptr.vmem [resolvable:$true] %s30_s19  ;;  %s21_s21 = int_to_ptr.vmem [resolvable:$true] %s20_s21 }
   0x5   :  { %s1417_s24 = scalar_lea.hbm %s1864_s1, 256 }
   0x6   :  { %p1418_p0 = scmp.ne.s32.totalorder %s1864_s1, %s1417_s24  ;;  %p1421_p1 = scmp.lt.u32.totalorder %s1417_s24, %s1864_s1 }
   0x8   :  { %p1423_p2 = pnand %p1421_p1, %p1418_p0 }
   0xa   :  { %1426 = shalt.err (!%p1423_p2)
}
   0xb   :  { %s1427_s29 = scalar_lea.vmem %s31_s19, 256  ;;  %p1432_p4 = scmp.lt.s32.totalorder %s31_s19, %s31_s19 }
   0xc   :  { %p1428_p3 = scmp.ne.s32.totalorder %s31_s19, %s1427_s29  ;;  %p1433_p5 = scmp.lt.s32.totalorder %s1427_s29, %s1427_s29 }
   0xe   :  { %p1434_p6 = por %p1433_p5, %p1432_p4 }
  0x10   :  { %p1435_p7 = pnand %p1434_p6, %p1428_p3 }
  0x12   :  { %1438 = shalt.err (!%p1435_p7)
}
  0x13   :  { %33 = dma.hbm_to_vmem [thread:$0]  %s1864_s1, 256, %s31_s19, [#allocation6]  }
  0x14   :  { %s1439_s9 = scalar_lea.hbm %s1863_s0, 512 }
  0x15   :  { %p1440_p8 = scmp.ne.s32.totalorder %s1863_s0, %s1439_s9  ;;  %p1443_p9 = scmp.lt.u32.totalorder %s1439_s9, %s1863_s0 }
  0x17   :  { %p1445_p10 = pnand %p1443_p9, %p1440_p8 }
  0x19   :  { %1448 = shalt.err (!%p1445_p10)
}
  0x1a   :  { %s1449_s14 = scalar_lea.vmem %s21_s21, 512  ;;  %p1454_p12 = scmp.lt.s32.totalorder %s21_s21, %s21_s21 }
  0x1b   :  { %p1450_p11 = scmp.ne.s32.totalorder %s21_s21, %s1449_s14  ;;  %p1455_p13 = scmp.lt.s32.totalorder %s1449_s14, %s1449_s14 }
  0x1d   :  { %p1456_p0 = por %p1455_p13, %p1454_p12 }
  0x1f   :  { %p1457_p1 = pnand %p1456_p0, %p1450_p11 }
  0x21   :  { %1460 = shalt.err (!%p1457_p1)
}
  0x22   :  { %23 = dma.hbm_to_vmem [thread:$0]  %s1863_s0, 512, %s21_s21, [#allocation3]  }
  0x23   :  { %s1537_s16 = smov [#allocation7]   ;;  %s1461_s20 = scalar_lea.hbm %s1866_s3, 2112 }
  0x24   :  { %s41_s17 = sshll.u32 %s1537_s16, 4  ;;  %p1462_p2 = scmp.ne.s32.totalorder %s1866_s3, %s1461_s20  ;;  %s42_s17 = int_to_ptr.vmem [resolvable:$true] %s41_s17 }
  0x25   :  { %p1465_p3 = scmp.lt.u32.totalorder %s1461_s20, %s1866_s3 }
  0x27   :  { %p1467_p4 = pnand %p1465_p3, %p1462_p2 }
  0x29   :  { %1470 = shalt.err (!%p1467_p4)
}
  0x2a   :  { %s1471_s26 = scalar_lea.vmem %s42_s17, 2112  ;;  %p1476_p6 = scmp.lt.s32.totalorder %s42_s17, %s42_s17 }
  0x2b   :  { %p1472_p5 = scmp.ne.s32.totalorder %s42_s17, %s1471_s26  ;;  %p1477_p7 = scmp.lt.s32.totalorder %s1471_s26, %s1471_s26 }
  0x2d   :  { %p1478_p8 = por %p1477_p7, %p1476_p6 }
  0x2f   :  { %p1479_p9 = pnand %p1478_p8, %p1472_p5 }
  0x31   :  { %1482 = shalt.err (!%p1479_p9)
}
  0x32   :  { %s1538_s0 = smov 64   ;;  %s1539_s21 = smov 4  }
  0x33   :  { %47 = dma.hbm_to_vmem [thread:$0]  %s1866_s3, 2112, %s42_s17, [#allocation6], %s1538_s0, %s1538_s0, %s1539_s21  }
  0x34   :  { %s1540_s29 = smov [#allocation8]   ;;  %s1483_s8 = scalar_lea.hbm %s1867_s4, 256 }
  0x35   :  { %s53_s30 = sshll.u32 %s1540_s29, 4  ;;  %p1484_p10 = scmp.ne.s32.totalorder %s1867_s4, %s1483_s8  ;;  %s54_s30 = int_to_ptr.vmem [resolvable:$true] %s53_s30 }
  0x36   :  { %p1487_p11 = scmp.lt.u32.totalorder %s1483_s8, %s1867_s4 }
  0x38   :  { %p1489_p12 = pnand %p1487_p11, %p1484_p10 }
  0x3a   :  { %1492 = shalt.err (!%p1489_p12)
}
  0x3b   :  { %s1493_s13 = scalar_lea.vmem %s54_s30, 256  ;;  %p1498_p0 = scmp.lt.s32.totalorder %s54_s30, %s54_s30 }
  0x3c   :  { %p1494_p13 = scmp.ne.s32.totalorder %s54_s30, %s1493_s13  ;;  %p1499_p1 = scmp.lt.s32.totalorder %s1493_s13, %s1493_s13 }
  0x3e   :  { %p1500_p2 = por %p1499_p1, %p1498_p0 }
  0x40   :  { %p1501_p3 = pnand %p1500_p2, %p1494_p13 }
  0x42   :  { %1504 = shalt.err (!%p1501_p3)
}
  0x43   :  { %s1541_s3 = smov 128   ;;  %s1542_s14 = smov 8  }
  0x44   :  { %59 = dma.hbm_to_vmem [thread:$0]  %s1867_s4, 256, %s54_s30, [#allocation9], %s1541_s3, %s1541_s3, %s1542_s14  }
  0x45   :  { %1527 = dma.done.wait [#allocation3], 512  }
  0x46   :  { %1528 = vsyncadd [#allocation3], 4294966784 }
  0x47   :  { %1529 = dma.done.wait [#allocation6], 2368  }
  0x48   :  { %1530 = vsyncadd [#allocation6], 4294964928 }
  0x49   :  { %1531 = dma.done.wait [#allocation9], 256  }
  0x4a   :  { %1532 = vsyncadd [#allocation9], 4294967040  ;;  %v1543_v0 = vmov 0.0   ;;  %vm1544_vm0 = vmmov 0   ;;  %vm621_vm1 = vcmask 1043456   ;;  %vm617_vm2 = vcmask 64512  }
  0x4b   :  { %1280 = vmatprep.subr.bf16.mxu0 %v1543_v0  ;;  %1282 = vmatprep.mubr.msk.bf16.mxu0 %vm1544_vm0, %v1543_v0  ;;  %v611_v1 = vld [vmem:[#allocation7] sm:$0xf]  ;;  %v609_v2 = vld [vmem:[%s1865_s2] sm:$0x3]  ;;  %v1377_v5 = vld [vmem:[#allocation7 + $0x4] sm:$0xff]   ;;  %v95_v13 = vlaneseq  ;;  %vm553_vm3 = vcmask 1043458  }
  0x4c   :  { %1286 = vmatprep.subr.bf16.mxu1 %v1543_v0  ;;  %1302 = vmatprep.mubr.msk.bf16.mxu1 %vm1544_vm0, %v1543_v0  ;;  %v623_v3 = vsel %vm621_vm1, %v611_v1, 0  ;;  %v610_v4 = vpack.c.bf16 %v609_v2, %v609_v2  ;;  %v1378_v6 = vld [vmem:[#allocation7 + $0xc] sm:$0xff]   ;;  %v1379_v7 = vld [vmem:[#allocation7 + $0x14] sm:$0xff]   ;;  %v1380_v8 = vld [vmem:[#allocation7 + $0x1c] sm:$0xff]   ;;  %vm303_vm4 = vcmask 1041408   ;;  %s1545_s2 = smov [#allocation10]  }
  0x4d   :  { %1281 = vmatpush3.bf16.msra.mxu0 %v623_v3  ;;  %1287 = vmatpush3.bf16.msra.mxu1 %v1377_v5  ;;  %v1381_v9 = vld [vmem:[#allocation7 + $0x24] sm:$0xff]   ;;  %v1382_v10 = vld [vmem:[#allocation7 + $0x2c] sm:$0xff]   ;;  %v1383_v11 = vld [vmem:[#allocation7 + $0x34] sm:$0xff]   ;;  %v1648_v18 = vshrl.u32 %v95_v13, 7  ;;  %s1186_s17 = sshll.u32 %s1545_s2, 4  ;;  %s1187_s17 = int_to_ptr.vmem [resolvable:$true] %s1186_s17 }
  0x4e   :  { %1306 = vmatprep.subr.bf16.mxu0 %v1543_v0  ;;  %1288 = vmatprep.subr.bf16.mxu1 %v1543_v0  ;;  %v1384_v12 = vld [vmem:[#allocation7 + $0x3c] sm:$0xff]   ;;  %v85_v14 = vld [vmem:[#allocation5] sm:$0xff]  ;;  %s1505_s18 = scalar_lea.vmem %s1187_s17, 32  ;;  %p1510_p5 = scmp.lt.s32.totalorder %s1187_s17, %s1187_s17 }
  0x4f   :  { %v86_v15 = vld [vmem:[#allocation5 + $0x8] sm:$0xff]  ;;  %v1644_v16 = vunpack.c.l.bf16 %v85_v14  ;;  %v1646_v17 = vunpack.c.h.bf16 %v85_v14  ;;  %v339_v19 = vsub.s32 1, %v1648_v18  ;;  %v343_v20 = vsub.s32 3, %v1648_v18  ;;  %v1664_v32 = vld [vmem:[#allocation2] sm:$0xff]  ;;  %v1679_v58 = vld [vmem:[#allocation2 + $0x10] sm:$0xff]  ;;  %p1506_p4 = scmp.ne.s32.totalorder %s1187_s17, %s1505_s18  ;;  %p1511_p6 = scmp.lt.s32.totalorder %s1505_s18, %s1505_s18 }
  0x50   :  { %1283 = vmatmul.mubr.msk.bf16.vlgmr.msra.gmra.mrb[0].mxu0 %vm617_vm2, %v610_v4  ;;  %v347_v21 = vsub.s32 5, %v1648_v18  ;;  %v1653_v22 = vunpack.c.l.bf16 %v86_v15  ;;  %v351_v23 = vsub.s32 7, %v1648_v18  ;;  %v1666_v33 = vunpack.c.h.bf16 %v86_v15  ;;  %v1670_v44 = vld [vmem:[#allocation2 + $0x8] sm:$0xff]  ;;  %v1692_v15 = vld [vmem:[#allocation2 + $0x18] sm:$0xff] }
  0x51   :  { %1322 = vmatprep.mubr.msk.bf16.mxu0 %vm1544_vm0, %v1543_v0  ;;  %1289 = vmatpush3.bf16.msra.mxu1 %v1378_v6  ;;  %v340_v24 = vrot.slane %v1644_v16, %v339_v19  ;;  %v344_v25 = vrot.slane %v1644_v16, %v343_v20  ;;  %v356_v27 = vrot.slane %v1646_v17, %v339_v19  ;;  %v77_v45 = vunpack.c.l.bf16 %v1664_v32  ;;  %p1512_p7 = por %p1511_p6, %p1510_p5 }
  0x52   :  { %1290 = vmatprep.subr.bf16.mxu1 %v1543_v0  ;;  %v348_v26 = vrot.slane %v1644_v16, %v347_v21  ;;  %v352_v28 = vrot.slane %v1644_v16, %v351_v23  ;;  %v360_v29 = vrot.slane %v1646_v17, %v343_v20  ;;  %v364_v30 = vrot.slane %v1646_v17, %v347_v21 }
  0x53   :  { %v368_v31 = vrot.slane %v1646_v17, %v351_v23  ;;  %v372_v34 = vrot.slane %v1653_v22, %v339_v19  ;;  %v376_v35 = vrot.slane %v1653_v22, %v343_v20  ;;  %v420_v36 = vrot.slane %v340_v24, %v339_v19  ;;  %p1513_p8 = pnand %p1512_p7, %p1506_p4 }
  0x54   :  { %v424_v37 = vrot.slane %v344_v25, %v339_v19  ;;  %v428_v38 = vrot.slane %v348_v26, %v339_v19  ;;  %v432_v39 = vrot.slane %v352_v28, %v339_v19  ;;  %v436_v40 = vrot.slane %v356_v27, %v339_v19 }
  0x55   :  { %1291 = vmatpush3.bf16.msra.mxu1 %v1379_v7  ;;  %v440_v41 = vrot.slane %v360_v29, %v339_v19  ;;  %v444_v42 = vrot.slane %v364_v30, %v339_v19  ;;  %v448_v43 = vrot.slane %v368_v31, %v339_v19  ;;  %v78_v46 = vunpack.c.h.bf16 %v1664_v32 }
  0x56   :  { %1292 = vmatprep.subr.bf16.mxu1 %v1543_v0  ;;  %v380_v47 = vrot.slane %v1653_v22, %v347_v21  ;;  %v384_v48 = vrot.slane %v1653_v22, %v351_v23  ;;  %v452_v49 = vrot.slane %v372_v34, %v339_v19  ;;  %v456_v50 = vrot.slane %v376_v35, %v339_v19 }
  0x57   :  { %v497_v51 = vcombine.low %v420_v36, %v424_v37  ;;  %v498_v52 = vcombine.low %v428_v38, %v432_v39  ;;  %v499_v53 = vcombine.low %v436_v40, %v440_v41  ;;  %v500_v54 = vcombine.low %v444_v42, %v448_v43 }
  0x58   :  { %v79_v55 = vunpack.c.l.bf16 %v1670_v44  ;;  %v388_v56 = vrot.slane %v1666_v33, %v339_v19  ;;  %v392_v57 = vrot.slane %v1666_v33, %v343_v20  ;;  %v396_v59 = vrot.slane %v1666_v33, %v347_v21 }
  0x59   :  { %1293 = vmatpush3.bf16.msra.mxu1 %v1380_v8  ;;  %v505_v60 = vrot.slane %v497_v51, 6  ;;  %v506_v61 = vrot.slane %v498_v52, 6  ;;  %v507_v62 = vrot.slane %v499_v53, 6  ;;  %v400_v63 = vrot.slane %v1666_v33, %v351_v23 }
  0x5a   :  { %1294 = vmatprep.subr.bf16.mxu1 %v1543_v0  ;;  %v460_v1 = vrot.slane %v380_v47, %v339_v19  ;;  %v464_v2 = vrot.slane %v384_v48, %v339_v19  ;;  %v501_v3 = vcombine.low %v452_v49, %v456_v50  ;;  %v80_v4 = vunpack.c.h.bf16 %v1670_v44 }
  0x5b   :  { %v508_v5 = vrot.slane %v500_v54, 6  ;;  %v521_v6 = vmul.f32 %v505_v60, %v77_v45  ;;  %v522_v7 = vmul.f32 %v506_v61, %v78_v46  ;;  %v81_v8 = vunpack.c.l.bf16 %v1679_v58 }
  0x5c   :  { %v476_v20 = vrot.slane %v396_v59, %v339_v19  ;;  %v480_v21 = vrot.slane %v400_v63, %v339_v19  ;;  %v502_v23 = vcombine.low %v460_v1, %v464_v2  ;;  %v509_v24 = vrot.slane %v501_v3, 6 }
  0x5d   :  { %1295 = vmatpush3.bf16.msra.mxu1 %v1381_v9  ;;  %v82_v9 = vunpack.c.h.bf16 %v1679_v58  ;;  %v537_v13 = vcombine.high %v521_v6, %v521_v6  ;;  %v538_v14 = vcombine.high %v522_v7, %v522_v7  ;;  %v524_v25 = vmul.f32 %v508_v5, %v80_v4 }
  0x5e   :  { %1296 = vmatprep.subr.bf16.mxu1 %v1543_v0  ;;  %v554_v26 = vsel %vm553_vm3, %v521_v6, 0.0  ;;  %v557_v28 = vsel %vm553_vm3, %v522_v7, 0.0  ;;  %v1700_v29 = vsub.s32 0, %v1648_v18  ;;  %v1703_v34 = vsub.s32 2, %v1648_v18 }
  0x5f   :  { %v555_v27 = vsel %vm553_vm3, %v537_v13, 0.0  ;;  %v559_v35 = vsel %vm553_vm3, %v538_v14, 0.0  ;;  %v1708_v36 = vsub.s32 4, %v1648_v18  ;;  %v1711_v37 = vsub.s32 6, %v1648_v18 }
  0x60   :  { %v556_v31 = vadd.f32 %v555_v27, %v554_v26  ;;  %v504_v39 = vcombine.low %v476_v20, %v480_v21  ;;  %v510_v40 = vrot.slane %v502_v23, 6  ;;  %v84_v42 = vunpack.c.h.bf16 %v1692_v15 }
  0x61   :  { %1297 = vmatpush3.bf16.msra.mxu1 %v1382_v10  ;;  %v523_v10 = vmul.f32 %v507_v62, %v79_v55  ;;  %v525_v43 = vmul.f32 %v509_v24, %v81_v8  ;;  %v540_v47 = vcombine.high %v524_v25, %v524_v25  ;;  %v98_v51 = vrot.slane %v1644_v16, %v1700_v29 }
  0x62   :  { %1298 = vmatprep.subr.bf16.mxu1 %v1543_v0  ;;  %v558_v41 = vadd.f32 %v557_v28, %v556_v31  ;;  %v102_v18 = vrot.slane %v1644_v16, %v1703_v34  ;;  %v106_v52 = vrot.slane %v1644_v16, %v1708_v36  ;;  %v110_v53 = vrot.slane %v1644_v16, %v1711_v37 }
  0x63   :  { %v539_v30 = vcombine.high %v523_v10, %v523_v10  ;;  %v561_v48 = vsel %vm553_vm3, %v523_v10, 0.0  ;;  %v114_v54 = vrot.slane %v1646_v17, %v1700_v29  ;;  %v512_v59 = vrot.slane %v504_v39, 6 }
  0x64   :  { %v560_v49 = vadd.f32 %v559_v35, %v558_v41  ;;  %v526_v60 = vmul.f32 %v510_v40, %v82_v9  ;;  %v541_v62 = vcombine.high %v525_v43, %v525_v43  ;;  %v565_v63 = vsel %vm553_vm3, %v524_v25, 0.0 }
  0x65   :  { %1299 = vmatpush3.bf16.msra.mxu1 %v1383_v11  ;;  %v468_v11 = vrot.slane %v388_v56, %v339_v19  ;;  %v563_v50 = vsel %vm553_vm3, %v539_v30, 0.0  ;;  %v118_v56 = vrot.slane %v1646_v17, %v1703_v34  ;;  %v567_v1 = vsel %vm553_vm3, %v540_v47, 0.0 }
  0x66   :  { %1300 = vmatprep.subr.bf16.mxu1 %v1543_v0  ;;  %v562_v61 = vadd.f32 %v561_v48, %v560_v49  ;;  %v122_v16 = vrot.slane %v1646_v17, %v1708_v36  ;;  %v126_v3 = vrot.slane %v1646_v17, %v1711_v37  ;;  %v178_v5 = vrot.slane %v98_v51, %v1700_v29 }
  0x67   :  { %v182_v6 = vrot.slane %v102_v18, %v1700_v29  ;;  %v186_v7 = vrot.slane %v106_v52, %v1700_v29  ;;  %v190_v10 = vrot.slane %v110_v53, %v1700_v29  ;;  %v528_v14 = vmul.f32 %v512_v59, %v84_v42 }
  0x68   :  { %v564_v2 = vadd.f32 %v563_v50, %v562_v61  ;;  %v542_v17 = vcombine.high %v526_v60, %v526_v60  ;;  %v569_v21 = vsel %vm553_vm3, %v525_v43, 0.0  ;;  %v571_v23 = vsel %vm553_vm3, %v541_v62, 0.0 }
  0x69   :  { %1301 = vmatpush3.bf16.msra.mxu1 %v1384_v12  ;;  %v472_v12 = vrot.slane %v392_v57, %v339_v19  ;;  %v83_v19 = vunpack.c.l.bf16 %v1692_v15  ;;  %v130_v25 = vrot.slane %v1653_v22, %v1700_v29  ;;  %v134_v26 = vrot.slane %v1653_v22, %v1703_v34  ;;  %v1200_v15 = vld [vmem:[#allocation8 + $0x3] ss:$0 sm:$0xff] }
  0x6a   :  { %1326 = vmatprep.subr.bf16.mxu1 %v1543_v0  ;;  %v566_v20 = vadd.f32 %v565_v63, %v564_v2  ;;  %v255_v27 = vcombine.low %v178_v5, %v182_v6  ;;  %v202_v28 = vrot.slane %v122_v16, %v1700_v29  ;;  %v206_v30 = vrot.slane %v126_v3, %v1700_v29 }
  0x6b   :  { %v503_v38 = vcombine.low %v468_v11, %v472_v12  ;;  %v194_v11 = vrot.slane %v114_v54, %v1700_v29  ;;  %v198_v12 = vrot.slane %v118_v56, %v1700_v29  ;;  %v256_v31 = vcombine.low %v186_v7, %v190_v10 }
  0x6c   :  { %v568_v24 = vadd.f32 %v567_v1, %v566_v20  ;;  %v544_v39 = vcombine.high %v528_v14, %v528_v14  ;;  %v573_v41 = vsel %vm553_vm3, %v526_v60, 0.0  ;;  %v575_v43 = vsel %vm553_vm3, %v542_v17, 0.0 }
  0x6d   :  { %v511_v57 = vrot.slane %v503_v38, 6  ;;  %v257_v35 = vcombine.low %v194_v11, %v198_v12  ;;  %v138_v47 = vrot.slane %v1653_v22, %v1708_v36  ;;  %v271_v48 = vmul.f32 %v255_v27, %v77_v45 }
  0x6e   :  { %v570_v40 = vadd.f32 %v569_v21, %v568_v24  ;;  %v272_v49 = vmul.f32 %v256_v31, %v78_v46  ;;  %v142_v51 = vrot.slane %v1653_v22, %v1711_v37  ;;  %v210_v18 = vrot.slane %v130_v25, %v1700_v29 }
  0x6f   :  { %v527_v13 = vmul.f32 %v511_v57, %v83_v19  ;;  %v214_v52 = vrot.slane %v134_v26, %v1700_v29  ;;  %v258_v53 = vcombine.low %v202_v28, %v206_v30  ;;  %v273_v54 = vmul.f32 %v257_v35, %v79_v55 }
  0x70   :  { %v572_v50 = vadd.f32 %v571_v23, %v570_v40  ;;  %v287_v56 = vcombine.high %v271_v48, %v271_v48  ;;  %v288_v57 = vcombine.high %v272_v49, %v272_v49  ;;  %v146_v46 = vrot.slane %v1666_v33, %v1700_v29 }
  0x71   :  { %v543_v38 = vcombine.high %v527_v13, %v527_v13  ;;  %v577_v45 = vsel %vm553_vm3, %v527_v13, 0.0  ;;  %v150_v22 = vrot.slane %v1666_v33, %v1703_v34  ;;  %v218_v60 = vrot.slane %v138_v47, %v1700_v29 }
  0x72   :  { %v574_v59 = vadd.f32 %v573_v41, %v572_v50  ;;  %v304_v61 = vsel %vm303_vm4, %v271_v48, 0.0  ;;  %v305_v62 = vsel %vm303_vm4, %v287_v56, 0.0  ;;  %v222_v63 = vrot.slane %v142_v51, %v1700_v29 }
  0x73   :  { %v579_v32 = vsel %vm553_vm3, %v543_v38, 0.0  ;;  %v306_v1 = vadd.f32 %v305_v62, %v304_v61  ;;  %v307_v16 = vsel %vm303_vm4, %v272_v49, 0.0  ;;  %v259_v2 = vcombine.low %v210_v18, %v214_v52 }
  0x74   :  { %v576_v55 = vadd.f32 %v575_v43, %v574_v59  ;;  %v274_v3 = vmul.f32 %v258_v53, %v80_v4  ;;  %v289_v5 = vcombine.high %v273_v54, %v273_v54  ;;  %v309_v6 = vsel %vm303_vm4, %v288_v57, 0.0 }
  0x75   :  { %v581_v7 = vsel %vm553_vm3, %v528_v14, 0.0  ;;  %v308_v10 = vadd.f32 %v307_v16, %v306_v1  ;;  %v583_v11 = vsel %vm553_vm3, %v544_v39, 0.0  ;;  %v154_v12 = vrot.slane %v1666_v33, %v1708_v36 }
  0x76   :  { %v578_v34 = vadd.f32 %v577_v45, %v576_v55  ;;  %v158_v13 = vrot.slane %v1666_v33, %v1711_v37  ;;  %v311_v20 = vsel %vm303_vm4, %v273_v54, 0.0  ;;  %v226_v44 = vrot.slane %v146_v46, %v1700_v29 }
  0x77   :  { %v230_v4 = vrot.slane %v150_v22, %v1700_v29  ;;  %v310_v21 = vadd.f32 %v309_v6, %v308_v10  ;;  %v260_v23 = vcombine.low %v218_v60, %v222_v63  ;;  %v275_v14 = vmul.f32 %v259_v2, %v81_v8 }
  0x78   :  { %v580_v17 = vadd.f32 %v579_v32, %v578_v34  ;;  %v290_v24 = vcombine.high %v274_v3, %v274_v3  ;;  %v313_v25 = vsel %vm303_vm4, %v289_v5, 0.0  ;;  %v315_v27 = vsel %vm303_vm4, %v274_v3, 0.0 }
  0x79   :  { %v312_v36 = vadd.f32 %v311_v20, %v310_v21  ;;  %v234_v37 = vrot.slane %v154_v12, %v1700_v29  ;;  %v238_v28 = vrot.slane %v158_v13, %v1700_v29  ;;  %v261_v31 = vcombine.low %v226_v44, %v230_v4  ;;  %v1198_v13 = vld [vmem:[#allocation8 + $0x1] ss:$0 sm:$0xff] }
  0x7a   :  { %v582_v26 = vadd.f32 %v581_v7, %v580_v17  ;;  %v276_v35 = vmul.f32 %v260_v23, %v82_v9  ;;  %v291_v38 = vcombine.high %v275_v14, %v275_v14  ;;  %v317_v8 = vsel %vm303_vm4, %v290_v24, 0.0  ;;  %v1197_v17 = vld [vmem:[#allocation8] ss:$0 sm:$0xff]  ;;  %v1202_v24 = vld [vmem:[#allocation8 + $0x4] ss:$0 sm:$0xff] }
  0x7b   :  { %v314_v30 = vadd.f32 %v313_v25, %v312_v36  ;;  %v319_v40 = vsel %vm303_vm4, %v275_v14, 0.0  ;;  %v262_v43 = vcombine.low %v234_v37, %v238_v28  ;;  %v277_v47 = vmul.f32 %v261_v31, %v83_v19  ;;  %v1199_v14 = vld [vmem:[#allocation8 + $0x2] ss:$0 sm:$0xff] }
  0x7c   :  { %v584_v33 = vadd.f32 %v583_v11, %v582_v26  ;;  %v292_v48 = vcombine.high %v276_v35, %v276_v35  ;;  %v321_v29 = vsel %vm303_vm4, %v291_v38, 0.0  ;;  %v323_v50 = vsel %vm303_vm4, %v276_v35, 0.0  ;;  %v1385_v11 = vld [vmem:[#allocation7 + $0x14] sm:$0xff]   ;;  %v1386_v38 = vld [vmem:[#allocation7 + $0x1c] sm:$0xff]  }
  0x7d   :  { %v316_v39 = vadd.f32 %v315_v27, %v314_v30  ;;  %v278_v9 = vmul.f32 %v262_v43, %v84_v42  ;;  %v293_v51 = vcombine.high %v277_v47, %v277_v47  ;;  %v327_v53 = vsel %vm303_vm4, %v277_v47, 0.0  ;;  %1307 = vmatpush3.bf16.msra.mxu0 %v1385_v11  ;;  %v1391_v43 = vld [vmem:[#allocation7 + $0x44] sm:$0xff]   ;;  %v1392_v47 = vld [vmem:[#allocation7 + $0x4c] sm:$0xff]  }
  0x7e   :  { %585 = vadd.xlane.f32.xlu0 %v584_v33  ;;  %v325_v18 = vsel %vm303_vm4, %v292_v48, 0.0  ;;  %1308 = vmatprep.subr.bf16.mxu0 %v1543_v0 }
  0x7f   :  { %v318_v41 = vadd.f32 %v317_v8, %v316_v39  ;;  %v294_v56 = vcombine.high %v278_v9, %v278_v9  ;;  %v329_v19 = vsel %vm303_vm4, %v293_v51, 0.0  ;;  %v331_v59 = vsel %vm303_vm4, %v278_v9, 0.0  ;;  %v1387_v8 = vld [vmem:[#allocation7 + $0x24] sm:$0xff]   ;;  %v1388_v39 = vld [vmem:[#allocation7 + $0x2c] sm:$0xff]  }
  0x81   :  { %v320_v49 = vadd.f32 %v319_v40, %v318_v41  ;;  %v333_v32 = vsel %vm303_vm4, %v294_v56, 0.0  ;;  %1309 = vmatpush3.bf16.msra.mxu0 %v1386_v38  ;;  %v1389_v40 = vld [vmem:[#allocation7 + $0x34] sm:$0xff]   ;;  %v1390_v41 = vld [vmem:[#allocation7 + $0x3c] sm:$0xff]   ;;  %v1212_v56 = vld [vmem:[#allocation8 + $0x6] ss:$0 sm:$0xff] }
  0x82   :  { %1310 = vmatprep.subr.bf16.mxu0 %v1543_v0  ;;  %v1408_v38 = vld [vmem:[#allocation7 + $0x7c] sm:$0xff]  }
  0x83   :  { %v322_v58 = vadd.f32 %v321_v29, %v320_v49 }
  0x85   :  { %v324_v52 = vadd.f32 %v323_v50, %v322_v58  ;;  %1311 = vmatpush3.bf16.msra.mxu0 %v1387_v8 }
  0x86   :  { %1312 = vmatprep.subr.bf16.mxu0 %v1543_v0 }
  0x87   :  { %v326_v54 = vadd.f32 %v325_v18, %v324_v52 }
  0x89   :  { %v328_v57 = vadd.f32 %v327_v53, %v326_v54  ;;  %1313 = vmatpush3.bf16.msra.mxu0 %v1388_v39  ;;  %v1211_v53 = vld [vmem:[#allocation8 + $0x5] ss:$0 sm:$0xff] }
  0x8a   :  { %1314 = vmatprep.subr.bf16.mxu0 %v1543_v0 }
  0x8b   :  { %v330_v45 = vadd.f32 %v329_v19, %v328_v57 }
  0x8d   :  { %v332_v46 = vadd.f32 %v331_v59, %v330_v45  ;;  %1315 = vmatpush3.bf16.msra.mxu0 %v1389_v40  ;;  %v1393_v45 = vld [vmem:[#allocation7 + $0x24] sm:$0xff]  }
  0x8e   :  { %1316 = vmatprep.subr.bf16.mxu0 %v1543_v0 }
  0x8f   :  { %v334_v22 = vadd.f32 %v333_v32, %v332_v46  ;;  %v1394_v32 = vld [vmem:[#allocation7 + $0x2c] sm:$0xff]   ;;  %v1395_v46 = vld [vmem:[#allocation7 + $0x34] sm:$0xff]  }
  0x91   :  { %335 = vadd.xlane.f32.xlu0 %v334_v22  ;;  %1317 = vmatpush3.bf16.msra.mxu0 %v1390_v41  ;;  %v1396_v22 = vld [vmem:[#allocation7 + $0x3c] sm:$0xff]  }
  0x92   :  { %1318 = vmatprep.subr.bf16.mxu0 %v1543_v0 }
  0x95   :  { %1319 = vmatpush3.bf16.msra.mxu0 %v1391_v43 }
  0x96   :  { %1320 = vmatprep.subr.bf16.mxu0 %v1543_v0 }
  0x99   :  { %1321 = vmatpush3.bf16.msra.mxu0 %v1392_v47 }
  0x9a   :  { %1346 = vmatprep.subr.bf16.mxu0 %v1543_v0 }
 0x10b   :  { %v586_v12 = vpop.xlane.xlu0 %585 }
 0x10c   :  { %v598_v20 = vmul.f32 %v1198_v13, %v586_v12 }
 0x10e   :  { %v600_v4 = vrot.slane %v598_v20, 2 }
 0x11e   :  { %v336_v44 = vpop.xlane.xlu0 %335 }
 0x11f   :  { %v592_v21 = vmul.f32 %v1197_v17, %v336_v44  ;;  %v1401_v17 = vld [vmem:[#allocation7 + $0x44] sm:$0xff]   ;;  %v1222_v44 = vld [vmem:[#allocation8 + $0x8] ss:$0 sm:$0xff] }
 0x121   :  { %v602_v23 = vadd.f32 %v600_v4, %v592_v21 }
 0x123   :  { %v659_v42 = vpop.f32.mrb[0].mxu0  ;;  %v608_v26 = vadd.f32 %v1199_v14, %v602_v23 }
 0x124   :  { %v660_v60 = vadd.f32 %v1200_v15, %v659_v42  ;;  %v1284_v61 = vpop.f32.mrb[1].mxu0  ;;  %v1397_v15 = vld [vmem:[#allocation7 + $0x44] sm:$0xff]   ;;  %v1398_v42 = vld [vmem:[#allocation7 + $0x4c] sm:$0xff]  }
 0x125   :  { %v662_v62 = vpop.f32.mrb[2].mxu0  ;;  %v1400_v61 = vld [vmem:[#allocation7 + $0x5c] sm:$0xff]  }
 0x126   :  { %v665_v55 = vmul.f32 %v660_v60, %v660_v60  ;;  %v1285_v63 = vpop.f32.mrb[3].mxu0  ;;  %v1213_v62 = vld [vmem:[#allocation8 + $0x7] ss:$0 sm:$0xff] }
 0x128   :  { %v666_v1 = vmul.f32 %v665_v55, %v660_v60 }
 0x12a   :  { %v667_v16 = vmul.f32 0.044715, %v666_v1 }
 0x12c   :  { %v668_v2 = vadd.f32 %v667_v16, %v660_v60 }
 0x12e   :  { %v669_v3 = vmul.f32 0.7978846, %v668_v2 }
 0x130   :  { %1409 = vtanh.f32 %v669_v3 }
 0x13a   :  { %v1410_v5 = vpop.eup %1409 }
 0x13b   :  { %v671_v6 = vadd.f32 1.0, %v1410_v5 }
 0x13d   :  { %v672_v34 = vmul.f32 0.5, %v671_v6 }
 0x13f   :  { %v673_v7 = vmul.f32 %v672_v34, %v660_v60  ;;  %v1399_v60 = vld [vmem:[#allocation7 + $0x54] sm:$0xff]  }
 0x141   :  { %v674_v10 = vpack.c.bf16 %v673_v7, %v673_v7 }
 0x143   :  { %1303 = vmatmul.mubr.bf16.vlgmr.msra.gmra.mrb[0].mxu1 %v674_v10 }
 0x144   :  { %1342 = vmatprep.mubr.msk.bf16.mxu1 %vm1544_vm0, %v1543_v0  ;;  %1327 = vmatpush3.bf16.msra.mxu1 %v1393_v45 }
 0x145   :  { %1328 = vmatprep.subr.bf16.mxu1 %v1543_v0 }
 0x148   :  { %1329 = vmatpush3.bf16.msra.mxu1 %v1394_v32 }
 0x149   :  { %1330 = vmatprep.subr.bf16.mxu1 %v1543_v0 }
 0x14c   :  { %1331 = vmatpush3.bf16.msra.mxu1 %v1395_v46 }
 0x14d   :  { %1332 = vmatprep.subr.bf16.mxu1 %v1543_v0 }
 0x150   :  { %1333 = vmatpush3.bf16.msra.mxu1 %v1396_v22 }
 0x151   :  { %1334 = vmatprep.subr.bf16.mxu1 %v1543_v0 }
 0x154   :  { %1335 = vmatpush3.bf16.msra.mxu1 %v1397_v15 }
 0x155   :  { %1336 = vmatprep.subr.bf16.mxu1 %v1543_v0 }
 0x158   :  { %1337 = vmatpush3.bf16.msra.mxu1 %v1398_v42 }
 0x159   :  { %1338 = vmatprep.subr.bf16.mxu1 %v1543_v0 }
 0x15c   :  { %1339 = vmatpush3.bf16.msra.mxu1 %v1399_v60 }
 0x15d   :  { %1340 = vmatprep.subr.bf16.mxu1 %v1543_v0 }
 0x160   :  { %1341 = vmatpush3.bf16.msra.mxu1 %v1400_v61 }
 0x216   :  { %v778_v25 = vpop.f32.mrb[0].mxu1 }
 0x217   :  { %v779_v36 = vadd.f32 %v1202_v24, %v778_v25  ;;  %v1304_v27 = vpop.f32.mrb[1].mxu1 }
 0x218   :  { %v781_v33 = vpop.f32.mrb[2].mxu1 }
 0x219   :  { %v1817_v37 = vadd.f32 %v779_v36, %v608_v26  ;;  %v1305_v28 = vpop.f32.mrb[3].mxu1  ;;  %v1402_v33 = vld [vmem:[#allocation7 + $0x4c] sm:$0xff]  }
 0x21a   :  { %v1403_v28 = vld [vmem:[#allocation7 + $0x54] sm:$0xff]  }
 0x21b   :  { %v787_v30 = vsel %vm303_vm4, %v1817_v37, 0.0  ;;  %v791_v31 = vmul.f32 %v1817_v37, %v1817_v37 }
 0x21c   :  { %788 = vadd.xlane.f32.xlu1 %v787_v30  ;;  %v1404_v30 = vld [vmem:[#allocation7 + $0x5c] sm:$0xff]  }
 0x21d   :  { %v792_v35 = vsel %vm303_vm4, %v791_v31, 0.0  ;;  %v1405_v31 = vld [vmem:[#allocation7 + $0x64] sm:$0xff]  }
 0x220   :  { %793 = vadd.xlane.f32.xlu1 %v792_v35  ;;  %v1407_v35 = vld [vmem:[#allocation7 + $0x74] sm:$0xff]  }
 0x2a9   :  { %v789_v48 = vpop.xlane.xlu1 %788 }
 0x2aa   :  { %v790_v29 = vmul.f32 0.03125, %v789_v48 }
 0x2ac   :  { %v796_v50 = vmul.f32 %v790_v29, %v790_v29  ;;  %v798_v18 = vsub.f32 %v1817_v37, %v790_v29 }
 0x2ad   :  { %v794_v49 = vpop.xlane.xlu1 %793 }
 0x2ae   :  { %v795_v58 = vmul.f32 0.03125, %v794_v49 }
 0x2b0   :  { %v797_v9 = vsub.f32 %v795_v58, %v796_v50  ;;  %v1231_v50 = vld [vmem:[#allocation8 + $0x9] ss:$0 sm:$0xff] }
 0x2b2   :  { %v799_v51 = vadd.f32 1e-05, %v797_v9  ;;  %v1232_v9 = vld [vmem:[#allocation8 + $0xa] ss:$0 sm:$0xff] }
 0x2b4   :  { %1411 = vrsqrt.f32 %v799_v51 }
 0x2be   :  { %v1412_v52 = vpop.eup %1411 }
 0x2bf   :  { %v801_v54 = vmul.f32 %v1412_v52, %v798_v18 }
 0x2c1   :  { %v806_v19 = vmul.f32 %v1211_v53, %v801_v54  ;;  %v1233_v53 = vld [vmem:[#allocation8 + $0xb] ss:$0 sm:$0xff] }
 0x2c3   :  { %v811_v57 = vadd.f32 %v1212_v56, %v806_v19 }
 0x2c5   :  { %v812_v59 = vpack.c.bf16 %v811_v57, %v811_v57 }
 0x2c7   :  { %1323 = vmatmul.mubr.bf16.vlgmr.msra.gmra.mrb[4].mxu0 %v812_v59 }
 0x2c8   :  { %1362 = vmatprep.mubr.msk.bf16.mxu0 %vm1544_vm0, %v1543_v0  ;;  %1347 = vmatpush3.bf16.msra.mxu0 %v1401_v17 }
 0x2c9   :  { %1348 = vmatprep.subr.bf16.mxu0 %v1543_v0 }
 0x2cc   :  { %1349 = vmatpush3.bf16.msra.mxu0 %v1402_v33 }
 0x2cd   :  { %1350 = vmatprep.subr.bf16.mxu0 %v1543_v0 }
 0x2d0   :  { %1351 = vmatpush3.bf16.msra.mxu0 %v1403_v28 }
 0x2d1   :  { %1352 = vmatprep.subr.bf16.mxu0 %v1543_v0 }
 0x2d4   :  { %1353 = vmatpush3.bf16.msra.mxu0 %v1404_v30 }
 0x2d5   :  { %1354 = vmatprep.subr.bf16.mxu0 %v1543_v0 }
 0x2d8   :  { %1355 = vmatpush3.bf16.msra.mxu0 %v1405_v31 }
 0x2d9   :  { %1356 = vmatprep.subr.bf16.mxu0 %v1543_v0 }
 0x39a   :  { %v916_v55 = vpop.f32.mrb[4].mxu0 }
 0x39b   :  { %v917_v63 = vadd.f32 %v1213_v62, %v916_v55  ;;  %v1324_v1 = vpop.f32.mrb[5].mxu0 }
 0x39c   :  { %v919_v16 = vpop.f32.mrb[6].mxu0 }
 0x39d   :  { %v922_v2 = vmul.f32 %v917_v63, %v917_v63  ;;  %v1325_v3 = vpop.f32.mrb[7].mxu0 }
 0x39f   :  { %v923_v5 = vmul.f32 %v922_v2, %v917_v63 }
 0x3a1   :  { %v924_v6 = vmul.f32 0.044715, %v923_v5 }
 0x3a3   :  { %v925_v34 = vadd.f32 %v924_v6, %v917_v63 }
 0x3a5   :  { %v926_v7 = vmul.f32 0.7978846, %v925_v34 }
 0x3a7   :  { %1413 = vtanh.f32 %v926_v7 }
 0x3b1   :  { %v1414_v10 = vpop.eup %1413 }
 0x3b2   :  { %v928_v11 = vadd.f32 1.0, %v1414_v10 }
 0x3b4   :  { %v929_v12 = vmul.f32 0.5, %v928_v11 }
 0x3b6   :  { %v930_v13 = vmul.f32 %v929_v12, %v917_v63 }
 0x3b8   :  { %v931_v20 = vpack.c.bf16 %v930_v13, %v930_v13 }
 0x3ba   :  { %1343 = vmatmul.mubr.bf16.vlgmr.msra.gmra.mrb[4].mxu1 %v931_v20 }
 0x48d   :  { %v1035_v4 = vpop.f32.mrb[4].mxu1 }
 0x48e   :  { %v1036_v21 = vadd.f32 %v1222_v44, %v1035_v4  ;;  %v1344_v23 = vpop.f32.mrb[5].mxu1 }
 0x48f   :  { %v1038_v14 = vpop.f32.mrb[6].mxu1 }
 0x490   :  { %v1041_v24 = vadd.f32 %v1036_v21, %v1817_v37  ;;  %v1345_v25 = vpop.f32.mrb[7].mxu1  ;;  %v1406_v37 = vld [vmem:[#allocation7 + $0x6c] sm:$0xff]  }
 0x491   :  { %1357 = vmatpush3.bf16.msra.mxu0 %v1406_v37 }
 0x492   :  { %v1044_v26 = vsel %vm303_vm4, %v1041_v24, 0.0  ;;  %v1048_v36 = vmul.f32 %v1041_v24, %v1041_v24  ;;  %1358 = vmatprep.subr.bf16.mxu0 %v1543_v0 }
 0x493   :  { %1045 = vadd.xlane.f32.xlu0 %v1044_v26 }
 0x494   :  { %v1049_v27 = vsel %vm303_vm4, %v1048_v36, 0.0 }
 0x495   :  { %1050 = vadd.xlane.f32.xlu1 %v1049_v27  ;;  %1359 = vmatpush3.bf16.msra.mxu0 %v1407_v35 }
 0x496   :  { %1360 = vmatprep.subr.bf16.mxu0 %v1543_v0 }
 0x499   :  { %1361 = vmatpush3.bf16.msra.mxu0 %v1408_v38 }
 0x520   :  { %v1046_v8 = vpop.xlane.xlu0 %1045 }
 0x521   :  { %v1047_v39 = vmul.f32 0.03125, %v1046_v8 }
 0x522   :  { %v1051_v40 = vpop.xlane.xlu1 %1050 }
 0x523   :  { %v1053_v41 = vmul.f32 %v1047_v39, %v1047_v39  ;;  %v1052_v43 = vmul.f32 0.03125, %v1051_v40  ;;  %v1055_v29 = vsub.f32 %v1041_v24, %v1047_v39 }
 0x525   :  { %v1054_v47 = vsub.f32 %v1052_v43, %v1053_v41 }
 0x527   :  { %v1056_v48 = vadd.f32 1e-05, %v1054_v47 }
 0x529   :  { %1415 = vrsqrt.f32 %v1056_v48 }
 0x533   :  { %v1416_v49 = vpop.eup %1415 }
 0x534   :  { %v1058_v58 = vmul.f32 %v1416_v49, %v1055_v29 }
 0x536   :  { %v1063_v51 = vmul.f32 %v1231_v50, %v1058_v58 }
 0x538   :  { %v1068_v18 = vadd.f32 %v1232_v9, %v1063_v51 }
 0x53a   :  { %v1069_v52 = vpack.c.bf16 %v1068_v18, %v1068_v18 }
 0x53c   :  { %1363 = vmatmul.mubr.bf16.vlgmr.msra.gmra.mrb[8].mxu0 %v1069_v52 }
 0x60f   :  { %v1173_v0 = vpop.f32.mrb[8].mxu0 }
 0x610   :  { %v1174_v54 = vadd.f32 %v1233_v53, %v1173_v0  ;;  %v1364_v56 = vpop.f32.mrb[9].mxu0 }
 0x611   :  { %v1176_v19 = vpop.f32.mrb[10].mxu0 }
 0x612   :  { %1179 = vst [vmem:[#allocation10] sm:$0x3] %v1174_v54  ;;  %v1365_v57 = vpop.f32.mrb[11].mxu0 }
 0x613   :  { %1516 = shalt.err (!%p1513_p8)
}
 0x614   :  { %s1517_s22 = scalar_lea.hbm %s1868_s5, 32 }
 0x615   :  { %p1518_p9 = scmp.ne.s32.totalorder %s1868_s5, %s1517_s22  ;;  %p1521_p10 = scmp.lt.u32.totalorder %s1517_s22, %s1868_s5 }
 0x617   :  { %p1523_p11 = pnand %p1521_p10, %p1518_p9 }
 0x619   :  { %1526 = shalt.err (!%p1523_p11)
}
 0x61a   :  { %1189 = dma.vmem_to_hbm [thread:$0]  %s1187_s17, 32, %s1868_s5, [#allocation4]  }
 0x61b   :  { %1533 = dma.done.wait [#allocation4], 32  }
 0x61c   :  { %1534 = vsyncadd [#allocation4], 4294967264 }
 0x61d   :  { %1193 = vsyncpa [#allocation3], 1 }
 0x61e   :  { %1194 = vsyncpa [#allocation6], 1 }
 0x61f   :  { %1195 = vsyncpa [#allocation9], 1 }
 0x620   :  { %1196 = vsyncpa [#allocation4], 1 }

</bundles_post_ra>
